<compile_context>
chip_gen: v7x
topology: tpu7x:2x2x1
jax: 0.10.0
libtpu: 0.0.40
codegen_flags: <defaults>
</compile_context>

<pallas_src>
from functools import partial

import numpy as np
import jax
import jax.numpy as jnp
from jax import lax
from jax.experimental import pallas as pl
from jax.experimental.pallas import tpu as pltpu


def _round_up(x, m):
    return (x + m - 1) // m * m


# ----------------------- int32 counter hash (in-kernel RNG) -----------------
def _srl(v, s):
    """Logical right shift for int32 (arithmetic shift + mask)."""
    return jnp.right_shift(v, s) & ((1 << (32 - s)) - 1)


def _fmix32(v):
    """murmur3 finalizer; int32 multiply wraps (two's complement) in XLA."""
    v = v ^ _srl(v, 16)
    v = v * (-2048144789)      # 0x85EBCA6B
    v = v ^ _srl(v, 13)
    v = v * (-1028477387)      # 0xC2B2AE35
    v = v ^ _srl(v, 16)
    return v


# ----------------------------- Pallas kernel -------------------------------
def _vq_kernel(seed_ref, x_ref, e_ref, en_ref, dist_ref, sind_ref,
               *, real_k, matmul_dtype, use_approx_recip):
    tn, dp = x_ref.shape          # (TN, Dp)  current N-tile of flattened inputs
    kp = e_ref.shape[0]           # (Kp, Dp)  padded codebook (VMEM resident, matmul dtype)

    x = x_ref[...]                                                    # f32

    # dist = -||x - e||^2 = 2 x.e^T - ||e||^2 - ||x||^2 (cross term on the MXU)
    xe = lax.dot_general(x.astype(matmul_dtype), e_ref[...],
                         (((1,), (1,)), ((), ())),
                         preferred_element_type=jnp.float32)          # (TN, Kp)
    x_sq = jnp.sum(x * x, axis=-1, keepdims=True)                     # (TN, 1) f32
    dist = (2.0 * xe - en_ref[...]) - x_sq                            # (TN, Kp)

    ki = lax.broadcasted_iota(jnp.int32, (tn, kp), 1)                 # reused iota
    if kp > real_k:  # mask padded codebook columns so they are never selected
        dist = jnp.where(ki < real_k, dist, -jnp.inf)
    dist_ref[...] = dist.astype(dist_ref.dtype)

    # --- on-chip noise: hash of (seed, h, global_n, k); independent of tiling.
    # TODO(synk): this RNG stream cannot match torch.rand / jax.random.gumbel.
    row_g = lax.broadcasted_iota(jnp.int32, (tn, kp), 0) + pl.program_id(1) * tn
    key = seed_ref[0] + pl.program_id(0) * 668265263
    v = (row_g * (-1640531527)) ^ (ki * (-2048144789)) ^ key
    v = _fmix32(v)
    u = _srl(v, 8).astype(jnp.float32) * (1.0 / (1 << 24))            # [0, 1)

    # gumbel-softmax (tau=1, hard=False), reformulated to save one log/elem:
    #   softmax(dist + g), g = -log(-log u)  ==  normalize(exp(dist - m) / E),
    #   with E = -log(u).
    e_noise = -jnp.log(jnp.maximum(u, 1e-9))                          # (TN, Kp)
    if use_approx_recip:
        inv_e = pl.reciprocal(e_noise, approx=True)                   # EUP fast path
    else:
        inv_e = 1.0 / e_noise                                         # interpret-safe
    m = jnp.max(dist, axis=-1, keepdims=True)
    p = jnp.exp(dist - m) * inv_e                                     # unnormalized probs

    kf = ki.astype(jnp.float32)
    num = jnp.sum(p * kf, axis=-1, keepdims=True)                     # (TN, 1)
    den = jnp.sum(p, axis=-1, keepdims=True)                          # (TN, 1)
    sind_ref[...] = num / den                                         # soft index


def euclidean_codebook_quantize(flatten, embed, seed, *,
                                matmul_dtype=jnp.bfloat16,
                                dist_dtype=jnp.float32,
                                tn_max=1024):
    """flatten: (H, N, D) f32, embed: (H, K, D) f32, seed: (1,) int32.

    Returns (dist (H,N,K), soft_index (H,N,1))."""
    H, N, D = flatten.shape
    K = embed.shape[1]

    Dp = _round_up(D, 128)
    Kp = _round_up(K, 128)

    # Generation-aware VMEM budget (v7x: 64 MiB/TC, v5e/v6e: 128 MiB).
    try:
        vmem_cap = int(pltpu.get_tpu_info().vmem_capacity_bytes)
    except Exception:
        vmem_cap = 64 * 1024 * 1024
    vmem_limit = min(int(vmem_cap * 0.65), 96 * 1024 * 1024)
    budget = int(vmem_limit * 0.85)

    e_bytes = np.dtype(matmul_dtype).itemsize
    d_bytes = np.dtype(dist_dtype).itemsize

    def _tile_bytes(tn):
        io = 2 * tn * Dp * 4                     # x tile, double buffered
        io += 2 * tn * Kp * d_bytes              # dist output
        io += 2 * tn * 128 * 4                   # soft-index output (lane padded)
        resident = 2 * Kp * Dp * e_bytes + 2 * 8 * Kp * 4   # codebook + ||e||^2
        temps = 8 * tn * Kp * 4 + 2 * tn * Dp * 4           # in-kernel temporaries
        return io + resident + temps

    TN = min(tn_max, max(_round_up(N, 8), 8))
    if TN >= 128:
        TN = (TN // 128) * 128                   # lane-friendly tile when possible

    def _shrink(t):
        t = t // 2
        if t >= 128:
            return (t // 128) * 128
        return max(8, (t // 8) * 8)

    while TN > 8 and _tile_bytes(TN) > budget:
        TN = _shrink(TN)
    Npad = _round_up(N, TN)

    # Pad only what actually needs padding (skip the HBM round trip if aligned).
    if (Npad != N) or (Dp != D):
        xp = jnp.zeros((H, Npad, Dp), jnp.float32).at[:, :N, :D].set(flatten)
    else:
        xp = flatten
    if (Kp != K) or (Dp != D):
        ep = jnp.zeros((H, Kp, Dp), jnp.float32).at[:, :K, :D].set(embed)
    else:
        ep = embed
    en = jnp.sum(ep * ep, axis=-1)[:, None, :]   # (H, 1, Kp) hoisted ||e||^2 (f32)
    ep_mm = ep.astype(matmul_dtype)              # codebook stored in matmul dtype

    use_approx_recip = jax.default_backend() == "tpu"
    kernel = partial(_vq_kernel, real_k=K, matmul_dtype=matmul_dtype,
                     use_approx_recip=use_approx_recip)

    dist, sind = pl.pallas_call(
        kernel,
        grid_spec=pltpu.PrefetchScalarGridSpec(
            num_scalar_prefetch=1,                # seed -> SMEM
            grid=(H, Npad // TN),
            in_specs=[
                pl.BlockSpec((None, TN, Dp), lambda h, i, s: (h, i, 0)),  # x tile
                pl.BlockSpec((None, Kp, Dp), lambda h, i, s: (h, 0, 0)),  # codebook resident
                pl.BlockSpec((None, 1, Kp), lambda h, i, s: (h, 0, 0)),   # ||e||^2 resident
            ],
            out_specs=[
                pl.BlockSpec((None, TN, Kp), lambda h, i, s: (h, i, 0)),  # dist
                pl.BlockSpec((None, TN, 1), lambda h, i, s: (h, i, 0)),   # soft index
            ],
        ),
        out_shape=[
            jax.ShapeDtypeStruct((H, Npad, Kp), dist_dtype),
            jax.ShapeDtypeStruct((H, Npad, 1), jnp.float32),
        ],
        compiler_params=pltpu.CompilerParams(
            dimension_semantics=("parallel", "parallel"),
            vmem_limit_bytes=vmem_limit,
        ),
    )(jnp.asarray(seed, jnp.int32).reshape(1), xp, ep_mm, en)

    if (Npad != N) or (Kp != K):
        dist = dist[:, :N, :K]
    if Npad != N:
        sind = sind[:, :N, :]
    return dist, sind


# ------------------------- kmeans init (plain JAX glue) ---------------------
def _cdist(a, b):
    """(H,N,D),(H,K,D) -> (H,N,K) euclidean via the matmul expansion."""
    a2 = jnp.sum(a * a, axis=-1)[..., :, None]
    b2 = jnp.sum(b * b, axis=-1)[..., None, :]
    ab = jnp.einsum('hnd,hkd->hnk', a, b)
    return jnp.sqrt(jnp.maximum(a2 - 2.0 * ab + b2, 0.0))


def kmeans_jax(samples, num_clusters, num_iters, key):
    """samples: (H, N, D).  Returns (means (H,K,D), bins (H,K))."""
    # TODO(synk): torch.randperm / torch.multinomial RNG cannot be matched; the
    # kmeans++ seeding draws from jax.random. all_reduce is a no-op
    # (use_ddp=False), matching the reference defaults.
    H, N, D = samples.shape
    K = num_clusters
    key, k0 = jax.random.split(key)
    first = jax.random.randint(k0, (), 0, N)
    means = jnp.zeros((H, K, D), samples.dtype).at[:, 0].set(samples[:, first])

    def pp_body(k, carry):
        means, key = carry
        d = _cdist(samples, means)
        valid = (jnp.arange(K) < k)[None, None, :]
        d = jnp.where(valid, d, jnp.inf)
        min_d = jnp.min(d, axis=-1)                              # (H, N)
        probs = min_d / jnp.sum(min_d, axis=-1, keepdims=True)
        key, sk = jax.random.split(key)
        idx = jax.random.categorical(sk, jnp.log(probs + 1e-30), axis=-1)  # (H,)
        chosen = jnp.take_along_axis(samples, idx[:, None, None], axis=1)[:, 0]
        means = means.at[:, k].set(chosen)
        return means, key

    means, key = lax.fori_loop(1, K, pp_body, (means, key))

    def lloyd_body(_, means):
        d = -_cdist(samples, means)                              # (H, N, K)
        buckets = jnp.argmax(d, axis=-1)                         # (H, N)
        one_hot = jax.nn.one_hot(buckets, K, dtype=samples.dtype)
        bins = jnp.sum(one_hot, axis=1)                          # (H, K)
        zero_mask = bins == 0
        bins_clamped = jnp.where(zero_mask, 1.0, bins)
        new_means = jnp.einsum('hnk,hnd->hkd', one_hot, samples) / bins_clamped[..., None]
        return jnp.where(zero_mask[..., None], means, new_means)

    means = lax.fori_loop(0, num_iters, lloyd_body, means)

    d = -_cdist(samples, means)
    buckets = jnp.argmax(d, axis=-1)
    bins = jnp.sum(jax.nn.one_hot(buckets, K, dtype=samples.dtype), axis=1)
    return means, bins


# ---------------------------- module wrapper --------------------------------
class EuclideanCodebook:
    def __init__(self, dim, codebook_size, num_codebooks=1, kmeans_init=True,
                 kmeans_iters=100, decay=0.1, eps=1e-05,
                 threshold_ema_dead_code=2, sample_codebook_temp=0):
        self.dim = dim
        self.codebook_size = codebook_size
        self.num_codebooks = num_codebooks
        self.kmeans_iters = kmeans_iters
        self.decay = decay
        self.eps = eps
        # kmeans_init=True -> embed starts at zeros (torch.zeros) and is
        # overwritten by kmeans(flatten) inside forward (init_embed_).
        self.embed = jnp.zeros((num_codebooks, codebook_size, dim), jnp.float32)
        self.embed_avg = self.embed
        self.cluster_size = jnp.zeros((num_codebooks, codebook_size), jnp.float32)

    def forward(self, x, key):
        x = x.astype(jnp.float32)
        if x.ndim < 4:
            x = x[None]                                   # add codebook dim
        H = x.shape[0]
        flatten = x.reshape(H, -1, x.shape[-1])           # (H, N, D)

        # init_embed_ : kmeans over the batch (reference hardcodes 30 iters)
        k_kmeans, k_gumbel = jax.random.split(key)
        embed, bins = kmeans_jax(flatten, self.codebook_size, 30, k_kmeans)
        self.embed = embed
        self.embed_avg = embed
        self.cluster_size = bins
        init_cb = embed

        seed = jax.random.randint(k_gumbel, (1,), 0, 2 ** 31 - 1, dtype=jnp.int32)
        dist, soft_ind = euclidean_codebook_quantize(flatten, embed, seed)

        # quantize forward value = embed[floor(soft_ind)] (batched_embedding's
        # one_hot(.long()) @ embed) -> exact codebook rows via integer gather,
        # no second MXU matmul.
        idx = jnp.clip(jnp.floor(soft_ind[..., 0]).astype(jnp.int32),
                       0, self.codebook_size - 1)                  # (H, N)
        quantize = jnp.take_along_axis(embed, idx[..., None], axis=1)   # (H, N, D)
        quantize = quantize.reshape(-1, self.dim)                  # (H*N, D)

        # returned embed_ind forward value = round(soft index) (straight-through)
        embed_ind = jnp.round(soft_ind).reshape(1, -1, 1)          # (1, H*N, 1)
        return quantize, embed_ind, dist, self.embed, flatten, init_cb


# --------------------------------- main --------------------------------------
if __name__ == "__main__":
    key = jax.random.PRNGKey(0)
    kx, kfwd = jax.random.split(key)

    batch, seq, dim, codebook_size = 2, 8, 32, 16
    x = jax.random.normal(kx, (batch, seq, dim), jnp.float32)

    cb = EuclideanCodebook(dim=dim, codebook_size=codebook_size)
    outs = jax.block_until_ready(cb.forward(x, kfwd))
    quantize, embed_ind, dist, embed, flatten, init_cb = outs

    # plain-JAX reference distances (broadcast form, f32)
    ref_dist = -jnp.sum((flatten[:, :, None, :] - embed[:, None, :, :]) ** 2, axis=-1)

    assert quantize.shape == (batch * seq, dim)
    assert embed_ind.shape == (1, batch * seq, 1)
    assert dist.shape == (1, batch * seq, codebook_size)
    assert np.all(np.isfinite(np.asarray(dist)))
    # default path uses the bf16 MXU cross-term -> bf16-appropriate tolerance
    assert np.allclose(np.asarray(dist), np.asarray(ref_dist), atol=7.5e-1, rtol=5e-2)

    # f32 matmul path: tight check that the kernel's distance math is correct
    dist_f32, _ = euclidean_codebook_quantize(
        flatten, embed, jnp.zeros((1,), jnp.int32), matmul_dtype=jnp.float32)
    assert np.allclose(np.asarray(dist_f32), np.asarray(ref_dist), atol=1e-3, rtol=1e-3)

    # indices must be valid codebook rows
    idx = np.asarray(embed_ind).reshape(-1)
    assert np.all((idx >= 0) & (idx < codebook_size))
    # quantize rows are bit-exact codebook entries (integer gather, no one-hot matmul)
    q_np = np.asarray(quantize)
    emb_np = np.asarray(embed[0])
    row_match = np.any(np.all(q_np[:, None, :] == emb_np[None, :, :], axis=-1), axis=-1)
    assert np.all(row_match)

    print("KERNEL_OK")
</pallas_src>

<mosaic_0001>
module attributes {stable_mosaic.version = 11 : i64} {
  func.func @_vq_kernel(%arg0: i32, %arg1: i32, %arg2: memref<1xi32, #tpu.memory_space<smem>>, %arg3: memref<1x16x128xf32, #tpu.memory_space<vmem>>, %arg4: memref<1x128x128xbf16, #tpu.memory_space<vmem>>, %arg5: memref<1x1x128xf32, #tpu.memory_space<vmem>>, %arg6: memref<1x16x128xf32, #tpu.memory_space<vmem>>, %arg7: memref<1x16x1xf32, #tpu.memory_space<vmem>>) attributes {dimension_semantics = [#tpu.dimension_semantics<parallel>, #tpu.dimension_semantics<parallel>], iteration_bounds = array<i64: 1, 1>, scalar_prefetch = 1 : i64, scratch_operands = 0 : i64, tpu.core_type = #tpu.core_type<tc>, window_params = [{transform_indices = @transform_0, window_bounds = array<i64: 1, 16, 128>}, {transform_indices = @transform_1, window_bounds = array<i64: 1, 128, 128>}, {transform_indices = @transform_2, window_bounds = array<i64: 1, 1, 128>}, {transform_indices = @transform_3, window_bounds = array<i64: 1, 16, 128>}, {transform_indices = @transform_4, window_bounds = array<i64: 1, 16, 1>}]} {
    %c0 = arith.constant 0 : index
    %c0_0 = arith.constant 0 : index
    %c0_1 = arith.constant 0 : index
    %0 = vector.load %arg3[%c0, %c0_0, %c0_1] : memref<1x16x128xf32, #tpu.memory_space<vmem>>, vector<1x16x128xf32>
    %1 = vector.shape_cast %0 : vector<1x16x128xf32> to vector<16x128xf32>
    %2 = arith.truncf %1 : vector<16x128xf32> to vector<16x128xbf16>
    %c0_2 = arith.constant 0 : index
    %c0_3 = arith.constant 0 : index
    %c0_4 = arith.constant 0 : index
    %3 = vector.load %arg4[%c0_2, %c0_3, %c0_4] : memref<1x128x128xbf16, #tpu.memory_space<vmem>>, vector<1x128x128xbf16>
    %4 = vector.shape_cast %3 : vector<1x128x128xbf16> to vector<128x128xbf16>
    %cst = arith.constant dense<0.000000e+00> : vector<16x128xf32>
    %5 = tpu.matmul %2, %4, %cst {dimension_numbers = #tpu.dot_dimension_numbers<[1], [1], [0], [0], [0, 0, 1, 0], [], []>} : vector<16x128xbf16>, vector<128x128xbf16>, vector<16x128xf32> -> vector<16x128xf32>
    %6 = arith.mulf %1, %1 : vector<16x128xf32>
    %cst_5 = arith.constant dense<0.000000e+00> : vector<16xf32>
    %7 = vector.multi_reduction <add>, %6, %cst_5 [1] : vector<16x128xf32> to vector<16xf32>
    %8 = vector.shape_cast %7 : vector<16xf32> to vector<16x1xf32>
    %cst_6 = arith.constant 2.000000e+00 : f32
    %9 = vector.broadcast %cst_6 : f32 to vector<16x128xf32>
    %10 = arith.mulf %9, %5 : vector<16x128xf32>
    %c0_7 = arith.constant 0 : index
    %c0_8 = arith.constant 0 : index
    %c0_9 = arith.constant 0 : index
    %11 = vector.load %arg5[%c0_7, %c0_8, %c0_9] : memref<1x1x128xf32, #tpu.memory_space<vmem>>, vector<1x1x128xf32>
    %12 = vector.shape_cast %11 : vector<1x1x128xf32> to vector<1x128xf32>
    %13 = vector.broadcast %12 : vector<1x128xf32> to vector<16x128xf32>
    %14 = arith.subf %10, %13 : vector<16x128xf32>
    %15 = vector.broadcast %8 : vector<16x1xf32> to vector<16x128xf32>
    %16 = arith.subf %14, %15 : vector<16x128xf32>
    %17 = tpu.iota {dimensions = array<i32: 1>} : vector<16x128xi32>
    %c16_i32 = arith.constant 16 : i32
    %18 = vector.broadcast %c16_i32 : i32 to vector<16x128xi32>
    %19 = arith.cmpi slt, %17, %18 : vector<16x128xi32>
    %cst_10 = arith.constant 0xFF800000 : f32
    %20 = vector.broadcast %cst_10 : f32 to vector<16x128xf32>
    %21 = arith.select %19, %16, %20 : vector<16x128xi1>, vector<16x128xf32>
    %c0_11 = arith.constant 0 : index
    %c0_12 = arith.constant 0 : index
    %c0_13 = arith.constant 0 : index
    %22 = vector.load %arg6[%c0_11, %c0_12, %c0_13] : memref<1x16x128xf32, #tpu.memory_space<vmem>>, vector<1x16x128xf32>
    %23 = vector.shape_cast %22 : vector<1x16x128xf32> to vector<16x128xf32>
    %24 = vector.shape_cast %21 : vector<16x128xf32> to vector<1x16x128xf32>
    tpu.vector_store %arg6[%c0_11, %c0_12, %c0_13], %24 {strides = array<i32>} : memref<1x16x128xf32, #tpu.memory_space<vmem>>, vector<1x16x128xf32>,
    %25 = tpu.iota {dimensions = array<i32: 0>} : vector<16x128xi32>
    %c16_i32_14 = arith.constant 16 : i32
    %26 = arith.muli %arg1, %c16_i32_14 : i32
    %27 = vector.broadcast %26 : i32 to vector<16x128xi32>
    %28 = arith.addi %25, %27 : vector<16x128xi32>
    %c0_15 = arith.constant 0 : index
    %29 = memref.load %arg2[%c0_15] : memref<1xi32, #tpu.memory_space<smem>>
    %c668265263_i32 = arith.constant 668265263 : i32
    %30 = arith.muli %arg0, %c668265263_i32 : i32
    %31 = arith.addi %29, %30 : i32
    %c-1640531527_i32 = arith.constant -1640531527 : i32
    %32 = vector.broadcast %c-1640531527_i32 : i32 to vector<16x128xi32>
    %33 = arith.muli %28, %32 : vector<16x128xi32>
    %c-2048144789_i32 = arith.constant -2048144789 : i32
    %34 = vector.broadcast %c-2048144789_i32 : i32 to vector<16x128xi32>
    %35 = arith.muli %17, %34 : vector<16x128xi32>
    %36 = arith.xori %33, %35 : vector<16x128xi32>
    %37 = vector.broadcast %31 : i32 to vector<16x128xi32>
    %38 = arith.xori %36, %37 : vector<16x128xi32>
    %c16_i32_16 = arith.constant 16 : i32
    %39 = vector.broadcast %c16_i32_16 : i32 to vector<16x128xi32>
    %40 = arith.shrsi %38, %39 : vector<16x128xi32>
    %c65535_i32 = arith.constant 65535 : i32
    %41 = vector.broadcast %c65535_i32 : i32 to vector<16x128xi32>
    %42 = arith.andi %40, %41 : vector<16x128xi32>
    %43 = arith.xori %38, %42 : vector<16x128xi32>
    %c-2048144789_i32_17 = arith.constant -2048144789 : i32
    %44 = vector.broadcast %c-2048144789_i32_17 : i32 to vector<16x128xi32>
    %45 = arith.muli %43, %44 : vector<16x128xi32>
    %c13_i32 = arith.constant 13 : i32
    %46 = vector.broadcast %c13_i32 : i32 to vector<16x128xi32>
    %47 = arith.shrsi %45, %46 : vector<16x128xi32>
    %c524287_i32 = arith.constant 524287 : i32
    %48 = vector.broadcast %c524287_i32 : i32 to vector<16x128xi32>
    %49 = arith.andi %47, %48 : vector<16x128xi32>
    %50 = arith.xori %45, %49 : vector<16x128xi32>
    %c-1028477387_i32 = arith.constant -1028477387 : i32
    %51 = vector.broadcast %c-1028477387_i32 : i32 to vector<16x128xi32>
    %52 = arith.muli %50, %51 : vector<16x128xi32>
    %c16_i32_18 = arith.constant 16 : i32
    %53 = vector.broadcast %c16_i32_18 : i32 to vector<16x128xi32>
    %54 = arith.shrsi %52, %53 : vector<16x128xi32>
    %c65535_i32_19 = arith.constant 65535 : i32
    %55 = vector.broadcast %c65535_i32_19 : i32 to vector<16x128xi32>
    %56 = arith.andi %54, %55 : vector<16x128xi32>
    %57 = arith.xori %52, %56 : vector<16x128xi32>
    %c8_i32 = arith.constant 8 : i32
    %58 = vector.broadcast %c8_i32 : i32 to vector<16x128xi32>
    %59 = arith.shrsi %57, %58 : vector<16x128xi32>
    %c16777215_i32 = arith.constant 16777215 : i32
    %60 = vector.broadcast %c16777215_i32 : i32 to vector<16x128xi32>
    %61 = arith.andi %59, %60 : vector<16x128xi32>
    %62 = arith.sitofp %61 : vector<16x128xi32> to vector<16x128xf32>
    %cst_20 = arith.constant 5.96046448E-8 : f32
    %63 = vector.broadcast %cst_20 : f32 to vector<16x128xf32>
    %64 = arith.mulf %62, %63 : vector<16x128xf32>
    %cst_21 = arith.constant 9.99999971E-10 : f32
    %65 = vector.broadcast %cst_21 : f32 to vector<16x128xf32>
    %66 = arith.maximumf %64, %65 : vector<16x128xf32>
    %67 = math.log %66 : vector<16x128xf32>
    %cst_22 = arith.constant 0.000000e+00 : f32
    %68 = vector.broadcast %cst_22 : f32 to vector<16x128xf32>
    %69 = arith.subf %68, %67 : vector<16x128xf32>
    %cst_23 = arith.constant 1.000000e+00 : f32
    %70 = vector.broadcast %cst_23 : f32 to vector<16x128xf32>
    %71 = arith.divf %70, %69 : vector<16x128xf32>
    %cst_24 = arith.constant dense<0xFF800000> : vector<16xf32>
    %72 = vector.multi_reduction <maximumf>, %21, %cst_24 [1] : vector<16x128xf32> to vector<16xf32>
    %73 = vector.shape_cast %72 : vector<16xf32> to vector<16x1xf32>
    %74 = vector.broadcast %73 : vector<16x1xf32> to vector<16x128xf32>
    %75 = arith.subf %21, %74 : vector<16x128xf32>
    %76 = math.exp %75 : vector<16x128xf32>
    %77 = arith.mulf %76, %71 : vector<16x128xf32>
    %78 = arith.sitofp %17 : vector<16x128xi32> to vector<16x128xf32>
    %79 = arith.mulf %77, %78 : vector<16x128xf32>
    %cst_25 = arith.constant dense<0.000000e+00> : vector<16xf32>
    %80 = vector.multi_reduction <add>, %79, %cst_25 [1] : vector<16x128xf32> to vector<16xf32>
    %81 = vector.shape_cast %80 : vector<16xf32> to vector<16x1xf32>
    %cst_26 = arith.constant dense<0.000000e+00> : vector<16xf32>
    %82 = vector.multi_reduction <add>, %77, %cst_26 [1] : vector<16x128xf32> to vector<16xf32>
    %83 = vector.shape_cast %82 : vector<16xf32> to vector<16x1xf32>
    %84 = arith.divf %81, %83 : vector<16x1xf32>
    %c0_27 = arith.constant 0 : index
    %c0_28 = arith.constant 0 : index
    %c0_29 = arith.constant 0 : index
    %85 = vector.load %arg7[%c0_27, %c0_28, %c0_29] : memref<1x16x1xf32, #tpu.memory_space<vmem>>, vector<1x16x1xf32>
    %86 = vector.shape_cast %85 : vector<1x16x1xf32> to vector<16x1xf32>
    %87 = vector.shape_cast %84 : vector<16x1xf32> to vector<1x16x1xf32>
    tpu.vector_store %arg7[%c0_27, %c0_28, %c0_29], %87 {strides = array<i32>} : memref<1x16x1xf32, #tpu.memory_space<vmem>>, vector<1x16x1xf32>,
    return
  }
  func.func @transform_0(%arg0: i32, %arg1: i32, %arg2: memref<1xi32, #tpu.memory_space<smem>>) -> (i32, i32, i32) {
    %c0_i32 = arith.constant 0 : i32
    %c0_i32_0 = arith.constant 0 : i32
    return %arg0, %arg1, %c0_i32 : i32, i32, i32
  }
  func.func @transform_1(%arg0: i32, %arg1: i32, %arg2: memref<1xi32, #tpu.memory_space<smem>>) -> (i32, i32, i32) {
    %c0_i32 = arith.constant 0 : i32
    %c0_i32_0 = arith.constant 0 : i32
    %c0_i32_1 = arith.constant 0 : i32
    return %arg0, %c0_i32, %c0_i32_0 : i32, i32, i32
  }
  func.func @transform_2(%arg0: i32, %arg1: i32, %arg2: memref<1xi32, #tpu.memory_space<smem>>) -> (i32, i32, i32) {
    %c0_i32 = arith.constant 0 : i32
    %c0_i32_0 = arith.constant 0 : i32
    %c0_i32_1 = arith.constant 0 : i32
    return %arg0, %c0_i32, %c0_i32_0 : i32, i32, i32
  }
  func.func @transform_3(%arg0: i32, %arg1: i32, %arg2: memref<1xi32, #tpu.memory_space<smem>>) -> (i32, i32, i32) {
    %c0_i32 = arith.constant 0 : i32
    %c0_i32_0 = arith.constant 0 : i32
    return %arg0, %arg1, %c0_i32 : i32, i32, i32
  }
  func.func @transform_4(%arg0: i32, %arg1: i32, %arg2: memref<1xi32, #tpu.memory_space<smem>>) -> (i32, i32, i32) {
    %c0_i32 = arith.constant 0 : i32
    %c0_i32_0 = arith.constant 0 : i32
    return %arg0, %arg1, %c0_i32 : i32, i32, i32
  }
}

</mosaic_0001>

<bundles_post_ra>
// kernel: tpu_custom_call.1
= control target key start
LH: loop header
LB: loop body
LE: loop exit
PB: predicated region body
PF: predicated region fallthrough
CT: control target
= control target key end

     0   :  { %12 = vsyncpa [#allocation5], 0  ;;  %s543_s0 = inlined_call_operand.<no memory space> [shape: s32[1], index: 0, kind: input, shape index: {}]   ;;  %s544_s1 = inlined_call_operand.hbm [shape: f32[1,16,128], index: 1, kind: input, shape index: {}]   ;;  %s545_s2 = inlined_call_operand.hbm [shape: bf16[1,128,128], index: 2, kind: input, shape index: {}]   ;;  %s546_s3 = inlined_call_operand.vmem [shape: f32[1,1,128], index: 3, kind: input, shape index: {}]   ;;  %s547_s4 = inlined_call_operand.hbm [shape: f32[1,16,128], index: 4, kind: output, shape index: {0}]   ;;  %s548_s5 = inlined_call_operand.vmem [shape: f32[1,16,1], index: 5, kind: output, shape index: {1}]  }
   0x1   :  { %13 = vsyncpa [#allocation8], 0 }
   0x2   :  { %14 = vsyncpa [#allocation6], 0  ;;  %s445_s18 = smov [#allocation4]   ;;  %s373_s22 = scalar_lea.hbm %s544_s1, 256 }
   0x3   :  { %s20_s19 = sshll.u32 %s445_s18, 4  ;;  %p374_p0 = scmp.ne.s32.totalorder %s544_s1, %s373_s22  ;;  %s21_s19 = int_to_ptr.vmem [resolvable:$true] %s20_s19 }
   0x4   :  { %p377_p1 = scmp.lt.u32.totalorder %s373_s22, %s544_s1 }
   0x6   :  { %p379_p2 = pnand %p377_p1, %p374_p0 }
   0x8   :  { %382 = shalt.err (!%p379_p2)
}
   0x9   :  { %s383_s27 = scalar_lea.vmem %s21_s19, 256  ;;  %p388_p4 = scmp.lt.s32.totalorder %s21_s19, %s21_s19 }
   0xa   :  { %p384_p3 = scmp.ne.s32.totalorder %s21_s19, %s383_s27  ;;  %p389_p5 = scmp.lt.s32.totalorder %s383_s27, %s383_s27 }
   0xc   :  { %p390_p6 = por %p389_p5, %p388_p4 }
   0xe   :  { %p391_p7 = pnand %p390_p6, %p384_p3 }
  0x10   :  { %394 = shalt.err (!%p391_p7)
}
  0x11   :  { %s446_s28 = smov 128   ;;  %s447_s29 = smov 8  }
  0x12   :  { %26 = dma.hbm_to_vmem [thread:$0]  %s544_s1, 256, %s21_s19, [#allocation5], %s446_s28, %s446_s28, %s447_s29  }
  0x13   :  { %s448_s7 = smov [#allocation7]   ;;  %s395_s11 = scalar_lea.hbm %s545_s2, 1024 }
  0x14   :  { %s32_s8 = sshll.u32 %s448_s7, 4  ;;  %p396_p8 = scmp.ne.s32.totalorder %s545_s2, %s395_s11  ;;  %s33_s8 = int_to_ptr.vmem [resolvable:$true] %s32_s8 }
  0x15   :  { %p399_p9 = scmp.lt.u32.totalorder %s395_s11, %s545_s2 }
  0x17   :  { %p401_p10 = pnand %p399_p9, %p396_p8 }
  0x19   :  { %404 = shalt.err (!%p401_p10)
}
  0x1a   :  { %s405_s16 = scalar_lea.vmem %s33_s8, 1024  ;;  %p410_p12 = scmp.lt.s32.totalorder %s33_s8, %s33_s8 }
  0x1b   :  { %p406_p11 = scmp.ne.s32.totalorder %s33_s8, %s405_s16  ;;  %p411_p13 = scmp.lt.s32.totalorder %s405_s16, %s405_s16 }
  0x1d   :  { %p412_p0 = por %p411_p13, %p410_p12 }
  0x1f   :  { %p413_p1 = pnand %p412_p0, %p406_p11 }
  0x21   :  { %416 = shalt.err (!%p413_p1)
}
  0x22   :  { %s449_s1 = smov 64   ;;  %s450_s17 = smov 4  }
  0x23   :  { %38 = dma.hbm_to_vmem [thread:$0]  %s545_s2, 1024, %s33_s8, [#allocation8], %s449_s1, %s449_s1, %s450_s17  }
  0x24   :  { %439 = dma.done.wait [#allocation5], 256  }
  0x25   :  { %440 = vsyncadd [#allocation5], 4294967040 }
  0x26   :  { %441 = dma.done.wait [#allocation8], 1024  }
  0x27   :  { %442 = vsyncadd [#allocation8], 4294966272  ;;  %v451_v0 = vmov 0.0   ;;  %vm452_vm0 = vmmov 0   ;;  %v349_v1 = vld [vmem:[#allocation7] sm:$0xff]   ;;  %v350_v2 = vld [vmem:[#allocation7 + $0x8] sm:$0xff]   ;;  %v175_v14 = vlaneseq  ;;  %v197_v37 = vstv %s543_s0 }
  0x28   :  { %320 = vmatprep.subr.bf16.mxu0 %v451_v0  ;;  %336 = vmatprep.mubr.msk.bf16.mxu0 %vm452_vm0, %v451_v0  ;;  %v48_v3 = vld [vmem:[#allocation4] sm:$0xff]  ;;  %v49_v5 = vld [vmem:[#allocation4 + $0x8] sm:$0xff]  ;;  %v353_v9 = vld [vmem:[#allocation7 + $0x20] sm:$0xff]   ;;  %s453_s0 = smov [#allocation9]  }
  0x29   :  { %321 = vmatpush3.bf16.xpose.msra.mxu0 %v349_v1  ;;  %v156_v4 = vmul.f32 %v48_v3, %v48_v3  ;;  %v157_v6 = vmul.f32 %v49_v5, %v49_v5  ;;  %v351_v7 = vld [vmem:[#allocation7 + $0x10] sm:$0xff]   ;;  %v352_v8 = vld [vmem:[#allocation7 + $0x18] sm:$0xff]   ;;  %v354_v10 = vld [vmem:[#allocation7 + $0x28] sm:$0xff]   ;;  %v50_v13 = vpack.c.bf16 %v49_v5, %v48_v3  ;;  %v514_v18 = vand.u32 127, %v175_v14  ;;  %s277_s22 = sshll.u32 %s453_s0, 4  ;;  %s278_s22 = int_to_ptr.vmem [resolvable:$true] %s277_s22 }
  0x2a   :  { %322 = vmatprep.subr.bf16.mxu0 %v451_v0  ;;  %v355_v11 = vld [vmem:[#allocation7 + $0x30] sm:$0xff]   ;;  %v356_v12 = vld [vmem:[#allocation7 + $0x38] sm:$0xff]   ;;  %v183_v31 = vshrl.u32 %v175_v14, 7  ;;  %s417_s23 = scalar_lea.vmem %s278_s22, 256  ;;  %p422_p3 = scmp.lt.s32.totalorder %s278_s22, %s278_s22 }
  0x2b   :  { %158 = vadd.xlane.f32.xlu0 %v156_v4  ;;  %v302_v17 = vld [vmem:[%s546_s3] ss:$0 sm:$0xff]  ;;  %vm177_vm1 = vcmp.lt.s32.totalorder %v514_v18, 16  ;;  %v194_v34 = vmul.u32 2246822507, %v514_v18  ;;  %p418_p2 = scmp.ne.s32.totalorder %s278_s22, %s417_s23  ;;  %p423_p4 = scmp.lt.s32.totalorder %s417_s23, %s417_s23 }
  0x2c   :  { %v184_v32 = vadd.s32 8, %v183_v31  ;;  %v192_v33 = vmul.u32 2654435769, %v183_v31 }
  0x2d   :  { %p424_p5 = por %p423_p4, %p422_p3 }
  0x2e   :  { %v193_v35 = vmul.u32 2654435769, %v184_v32  ;;  %v195_v36 = vxor.u32 %v194_v34, %v192_v33 }
  0x2f   :  { %160 = vadd.xlane.f32.xlu0 %v157_v6  ;;  %p425_p6 = pnand %p424_p5, %p418_p2 }
  0x30   :  { %v196_v38 = vxor.u32 %v194_v34, %v193_v35  ;;  %v198_v39 = vxor.u32 %v197_v37, %v195_v36 }
  0x31   :  { %323 = vmatpush3.bf16.xpose.msra.mxu0 %v350_v2 }
  0x32   :  { %324 = vmatprep.subr.bf16.mxu0 %v451_v0  ;;  %v199_v40 = vxor.u32 %v197_v37, %v196_v38  ;;  %v303_v41 = vshrl.u32 %v198_v39, 16 }
  0x34   :  { %v304_v42 = vshrl.u32 %v199_v40, 16  ;;  %v204_v43 = vxor.u32 %v303_v41, %v198_v39 }
  0x36   :  { %v205_v44 = vxor.u32 %v304_v42, %v199_v40  ;;  %v206_v45 = vmul.u32 2246822507, %v204_v43 }
  0x38   :  { %v207_v46 = vmul.u32 2246822507, %v205_v44  ;;  %v305_v47 = vshrl.u32 %v206_v45, 13 }
  0x39   :  { %325 = vmatpush3.bf16.xpose.msra.mxu0 %v351_v7 }
  0x3a   :  { %326 = vmatprep.subr.bf16.mxu0 %v451_v0  ;;  %v306_v48 = vshrl.u32 %v207_v46, 13  ;;  %v212_v49 = vxor.u32 %v305_v47, %v206_v45 }
  0x3c   :  { %v213_v50 = vxor.u32 %v306_v48, %v207_v46  ;;  %v214_v51 = vmul.u32 3266489909, %v212_v49 }
  0x3e   :  { %v307_v52 = vshrl.u32 %v214_v51, 16  ;;  %v215_v53 = vmul.u32 3266489909, %v213_v50 }
  0x40   :  { %v220_v54 = vxor.u32 %v307_v52, %v214_v51  ;;  %v308_v55 = vshrl.u32 %v215_v53, 16 }
  0x41   :  { %327 = vmatpush3.bf16.xpose.msra.mxu0 %v352_v8 }
  0x42   :  { %328 = vmatprep.subr.bf16.mxu0 %v451_v0  ;;  %v309_v56 = vshrl.u32 %v220_v54, 8  ;;  %v221_v57 = vxor.u32 %v308_v55, %v215_v53 }
  0x44   :  { %v226_v58 = vcvt.s32.f32 %v309_v56  ;;  %v310_v59 = vshrl.u32 %v221_v57, 8 }
  0x46   :  { %v228_v60 = vmul.f32 5.9604645e-08, %v226_v58  ;;  %v227_v61 = vcvt.s32.f32 %v310_v59 }
  0x48   :  { %v230_v62 = vmax.f32 %v228_v60, 1e-09  ;;  %v229_v63 = vmul.f32 5.9604645e-08, %v227_v61 }
  0x49   :  { %329 = vmatpush3.bf16.xpose.msra.mxu0 %v353_v9 }
  0x4a   :  { %330 = vmatprep.subr.bf16.mxu0 %v451_v0  ;;  %357 = vlog2.f32 %v230_v62 }
  0x51   :  { %331 = vmatpush3.bf16.xpose.msra.mxu0 %v354_v10 }
  0x52   :  { %332 = vmatprep.subr.bf16.mxu0 %v451_v0 }
  0x54   :  { %v358_v1 = vpop.eup %357 }
  0x55   :  { %v233_v2 = vmul.f32 0.6931472, %v358_v1 }
  0x57   :  { %v236_v4 = vsub.f32 0.0, %v233_v2 }
  0x59   :  { %333 = vmatpush3.bf16.xpose.msra.mxu0 %v355_v11 }
  0x5a   :  { %334 = vmatprep.subr.bf16.mxu0 %v451_v0  ;;  %v231_v0 = vmax.f32 %v229_v63, 1e-09 }
  0x5c   :  { %359 = vlog2.f32 %v231_v0 }
  0x5d   :  { %361 = vrcp.f32 %v236_v4 }
  0x61   :  { %335 = vmatpush3.bf16.xpose.msra.mxu0 %v356_v12 }
  0x66   :  { %v360_v3 = vpop.eup %359 }
  0x67   :  { %v235_v5 = vmul.f32 0.6931472, %v360_v3 }
  0x68   :  { %337 = vmatmul.mubr.bf16.vlgmr.msra.gmra.mrb[0].mxu0 %v50_v13  ;;  %v362_v13 = vpop.eup %361 }
  0x69   :  { %v237_v9 = vsub.f32 0.0, %v235_v5 }
  0xb8   :  { %v159_v15 = vpop.xlane.xlu0 %158 }
  0xbc   :  { %v161_v25 = vpop.xlane.xlu0 %160 }
 0x13b   :  { %v149_v16 = vpop.f32.mrb[0].mxu0 }
 0x13c   :  { %v162_v19 = vmul.f32 2.0, %v149_v16  ;;  %v338_v20 = vpop.f32.mrb[1].mxu0  ;;  %v254_v16 = vcvt.s32.f32 %v514_v18 }
 0x13d   :  { %v152_v21 = vpop.f32.mrb[2].mxu0 }
 0x13e   :  { %v171_v22 = vsub.f32 %v162_v19, %v302_v17  ;;  %v163_v23 = vmul.f32 2.0, %v152_v21  ;;  %v339_v24 = vpop.f32.mrb[3].mxu0 }
 0x140   :  { %v173_v26 = vsub.f32 %v171_v22, %v159_v15  ;;  %v172_v27 = vsub.f32 %v163_v23, %v302_v17 }
 0x142   :  { %v174_v28 = vsub.f32 %v172_v27, %v161_v25  ;;  %v178_v29 = vsel %vm177_vm1, %v173_v26, -inf }
 0x143   :  { %242 = vmax.xlane.f32.xlu1 %v178_v29  ;;  %180 = vst [vmem:[#allocation9] sm:$0xff] %v178_v29 }
 0x144   :  { %v179_v30 = vsel %vm177_vm1, %v174_v28, -inf }
 0x145   :  { %181 = vst [vmem:[#allocation9 + $0x8] sm:$0xff] %v179_v30 }
 0x147   :  { %244 = vmax.xlane.f32.xlu1 %v179_v30 }
 0x1d0   :  { %v243_v6 = vpop.xlane.xlu1 %242 }
 0x1d1   :  { %v246_v7 = vsub.f32 %v178_v29, %v243_v6 }
 0x1d3   :  { %v248_v8 = vmul.f32 1.442695, %v246_v7 }
 0x1d4   :  { %v245_v10 = vpop.xlane.xlu1 %244 }
 0x1d5   :  { %363 = vpow2.f32 %v248_v8  ;;  %v247_v11 = vsub.f32 %v179_v30, %v245_v10 }
 0x1d6   :  { %365 = vrcp.f32 %v237_v9 }
 0x1d7   :  { %v250_v12 = vmul.f32 1.442695, %v247_v11 }
 0x1d9   :  { %367 = vpow2.f32 %v250_v12 }
 0x1df   :  { %v364_v14 = vpop.eup %363 }
 0x1e0   :  { %v252_v15 = vmul.f32 %v364_v14, %v362_v13  ;;  %v366_v17 = vpop.eup %365 }
 0x1e2   :  { %261 = vadd.xlane.f32.xlu0 %v252_v15  ;;  %v255_v20 = vmul.f32 %v254_v16, %v252_v15 }
 0x1e3   :  { %v368_v19 = vpop.eup %367 }
 0x1e4   :  { %v253_v21 = vmul.f32 %v368_v19, %v366_v17 }
 0x1e6   :  { %257 = vadd.xlane.f32.xlu0 %v255_v20  ;;  %263 = vadd.xlane.f32.xlu1 %v253_v21  ;;  %v256_v22 = vmul.f32 %v254_v16, %v253_v21 }
 0x1ea   :  { %259 = vadd.xlane.f32.xlu1 %v256_v22 }
 0x1eb   :  { %428 = shalt.err (!%p425_p6)
}
 0x1ec   :  { %s429_s26 = scalar_lea.hbm %s547_s4, 256 }
 0x1ed   :  { %p430_p7 = scmp.ne.s32.totalorder %s547_s4, %s429_s26  ;;  %p433_p8 = scmp.lt.u32.totalorder %s429_s26, %s547_s4 }
 0x1ef   :  { %p435_p9 = pnand %p433_p8, %p430_p7 }
 0x1f1   :  { %438 = shalt.err (!%p435_p9)
}
 0x1f2   :  { %283 = dma.vmem_to_hbm [thread:$0]  %s278_s22, 256, %s547_s4, [#allocation6], %s446_s28, %s446_s28, %s447_s29   ;;  %vm269_vm2 = vcmask 7168  }
 0x26f   :  { %v262_v18 = vpop.xlane.xlu0 %261 }
 0x270   :  { %369 = vrcp.f32 %v262_v18 }
 0x273   :  { %v264_v23 = vpop.xlane.xlu1 %263  ;;  %v258_v25 = vpop.xlane.xlu0 %257 }
 0x274   :  { %371 = vrcp.f32 %v264_v23 }
 0x277   :  { %v260_v28 = vpop.xlane.xlu1 %259 }
 0x27a   :  { %v370_v24 = vpop.eup %369 }
 0x27b   :  { %v266_v26 = vmul.f32 %v370_v24, %v258_v25 }
 0x27d   :  { %270 = vst.msk [vmem:[%s548_s5] sm:$0xff] %vm269_vm2, %v266_v26 }
 0x27e   :  { %v372_v27 = vpop.eup %371 }
 0x27f   :  { %v268_v29 = vmul.f32 %v372_v27, %v260_v28 }
 0x281   :  { %271 = vst.msk [vmem:[%s548_s5 + $0x8] sm:$0xff] %vm269_vm2, %v268_v29 }
 0x282   :  { %443 = dma.done.wait [#allocation6], 256  }
 0x283   :  { %444 = vsyncadd [#allocation6], 4294967040 }
 0x284   :  { %291 = vsyncpa [#allocation5], 1 }
 0x285   :  { %292 = vsyncpa [#allocation8], 1 }
 0x286   :  { %293 = vsyncpa [#allocation6], 1 }

</bundles_post_ra>
